<compile_context>
chip_gen: v7x
topology: tpu7x:2x2x1
jax: 0.10.0
libtpu: 0.0.40
codegen_flags: <defaults>
</compile_context>

<pallas_src>
import jax
import jax.numpy as jnp
from jax.experimental import pallas as pl
from jax.experimental.pallas import tpu as pltpu

# Sobel taps (same fixed values as the PyTorch module; F.conv2d = cross-correlation).
SOBEL_X = ((-1.0, 0.0, 1.0),
           (-2.0, 0.0, 2.0),
           (-1.0, 0.0, 1.0))
SOBEL_Y = ((-1.0, -2.0, -1.0),
           ( 0.0,  0.0,  0.0),
           ( 1.0,  2.0,  1.0))

DEFAULT_BLOCK_BYTES = 4 * 1024 * 1024    # ~4 MiB blocks (v7x re-budget per review)
DEFAULT_VMEM_LIMIT = 48 * 1024 * 1024    # explicit scoped-VMEM limit, fits v7x 64 MiB


def _make_sobel_kernel(has_halo: bool, reduce_sum: bool):
    """Build the tile kernel.

    Refs:
      x_ref    : (Bt, TH, W)      image rows for this tile
      halo_ref : (Bt, 1, 2, W)    [row above tile, row below tile] (only if has_halo)
      out_ref  : (Bt, TH, W) gm   or  (Bt, 1) f32 per-image partial sums (reduce_sum)
    """

    def kernel(*refs):
        x_ref = refs[0]
        halo_ref = refs[1] if has_halo else None
        out_ref = refs[-1]

        x = x_ref[...].astype(jnp.float32)
        Bt, TH, W = x.shape

        if has_halo:
            halo = halo_ref[...].astype(jnp.float32)      # (Bt, 1, 2, W)
            above = halo[:, 0, 0:1, :]                    # (Bt, 1, W) row r = -1
            below = halo[:, 0, 1:2, :]                    # (Bt, 1, W) row r = TH
        else:
            above = jnp.float32(0.0)                      # zero padding at image border
            below = jnp.float32(0.0)

        # Tiny row masks (1, TH, 1): only rows 0 / TH-1 need the halo patch.
        r = jax.lax.broadcasted_iota(jnp.int32, (1, TH, 1), 1)
        is_first_row = r == 0
        is_last_row = r == TH - 1

        # Vertical +/-1 row shifts via non-negative XLU rolls, wrapped row patched
        # with the halo (zero at the true image border == conv2d zero padding).
        up = jnp.where(is_first_row, above, pltpu.roll(x, shift=1, axis=1))        # x[r-1]
        down = jnp.where(is_last_row, below, pltpu.roll(x, shift=TH - 1, axis=1))  # x[r+1]

        # Separable Sobel: vertical passes.
        s = up + 2.0 * x + down   # [1, 2, 1] smoothing   (for grad_x)
        t = down - up             # x[r+1] - x[r-1]       (for grad_y)

        # Tiny (1, 1, W) f32 column masks: zero out the wrapped lane.
        c = jax.lax.broadcasted_iota(jnp.int32, (1, 1, W), 2)
        mask_l = (c != 0).astype(jnp.float32)       # kills wrapped col at c == 0
        mask_r = (c != W - 1).astype(jnp.float32)   # kills wrapped col at c == W-1

        def shl(v):   # v[:, :, c-1], zero at c == 0
            return pltpu.roll(v, shift=1, axis=2) * mask_l

        def shr(v):   # v[:, :, c+1], zero at c == W-1
            return pltpu.roll(v, shift=W - 1, axis=2) * mask_r

        gx = shr(s) - shl(s)                 # horizontal [-1, 0, 1]
        gy = shl(t) + 2.0 * t + shr(t)       # horizontal [ 1, 2, 1]
        gm = jnp.sqrt(gx * gx + gy * gy)     # >= 0, so |gm| == gm

        if reduce_sum:
            @pl.when(pl.program_id(1) == 0)
            def _():
                out_ref[...] = jnp.zeros_like(out_ref)
            out_ref[...] += jnp.sum(gm, axis=(1, 2))[:, None]   # f32 accumulation
        else:
            out_ref[...] = gm.astype(out_ref.dtype)

    return kernel


def _sublane_quantum(dtype):
    itemsize = jnp.dtype(dtype).itemsize
    return {4: 8, 2: 16, 1: 32}.get(itemsize, 8)


def _choose_tiles(N, H, W, dtype, max_block_bytes):
    """Pick (batch_tile, row_tile) so one block stays under max_block_bytes.

    row_tile is a multiple of the dtype's sublane quantum that divides H (or H
    itself), so the block's last-two dims satisfy the tiling rule with W untiled.
    Keeps >= 2 grid steps along the (parallel) batch axis when N >= 2.
    """
    itemsize = jnp.dtype(dtype).itemsize
    q = _sublane_quantum(dtype)
    row_bytes = max(1, W * itemsize)
    max_rows = max(1, max_block_bytes // row_bytes)

    if H <= max_rows:
        th = H
    else:
        th = None
        start = min(H - (H % q) if H % q else H, (max_rows // q) * q)
        for cand in range(start, 0, -q):
            if H % cand == 0:
                th = cand
                break
        if th is None:
            # TODO(synk): support non-divisor H tiling (cdiv grid + masked tail);
            # for awkward H fall back to full-height blocks.
            th = H

    block_bytes = th * W * itemsize
    bt = 1
    for cand in range(N, 0, -1):
        if N % cand != 0:
            continue
        if cand > 1 and cand * block_bytes > max_block_bytes:
            continue
        if N >= 2 and N // cand < 2:
            continue  # keep >= 2 parallel batch steps (v7x megacore)
        bt = cand
        break
    return bt, th


def _sobel_pallas(xi, *, reduce_sum, max_block_bytes, vmem_limit_bytes):
    """xi: (N, H, W) -> (N, H, W) gm  or  (N, 1) f32 per-image sum(gm)."""
    N, H, W = xi.shape
    itemsize = jnp.dtype(xi.dtype).itemsize
    bt, th = _choose_tiles(N, H, W, xi.dtype, max_block_bytes)
    T = H // th
    has_halo = T > 1

    args = [xi]
    in_specs = [pl.BlockSpec((bt, th, W), lambda b, h: (b, h, 0))]

    if has_halo:
        # Halo rows per H-tile (zeros at the true image border = conv2d zero pad).
        halo = jnp.zeros((N, T, 2, W), xi.dtype)
        halo = halo.at[:, 1:, 0, :].set(xi[:, th - 1:(T - 1) * th:th, :])  # above
        halo = halo.at[:, :-1, 1, :].set(xi[:, th::th, :])                 # below
        args.append(halo)
        in_specs.append(pl.BlockSpec((bt, 1, 2, W), lambda b, h: (b, h, 0, 0)))

    if reduce_sum:
        out_shape = jax.ShapeDtypeStruct((N, 1), jnp.float32)
        out_specs = pl.BlockSpec((bt, 1), lambda b, h: (b, 0))   # accumulator over h
        semantics = ("parallel", "arbitrary")
        bytes_accessed = N * H * W * itemsize + N * 4
    else:
        out_shape = jax.ShapeDtypeStruct((N, H, W), xi.dtype)
        out_specs = pl.BlockSpec((bt, th, W), lambda b, h: (b, h, 0))
        semantics = ("parallel", "parallel")
        bytes_accessed = 2 * N * H * W * itemsize

    kernel = _make_sobel_kernel(has_halo, reduce_sum)
    return pl.pallas_call(
        kernel,
        out_shape=out_shape,
        grid=(N // bt, T),
        in_specs=in_specs,
        out_specs=out_specs,
        compiler_params=pltpu.CompilerParams(
            dimension_semantics=semantics,
            vmem_limit_bytes=vmem_limit_bytes),
        cost_estimate=pl.CostEstimate(
            flops=15 * N * H * W,
            transcendentals=N * H * W,
            bytes_accessed=bytes_accessed),
    )(*args)


def _check_input(x):
    if x.ndim != 4 or x.shape[1] != 1:
        raise ValueError("Expected input shape (N, 1, H, W)")


def gradient_magnitude(x, *, max_block_bytes=DEFAULT_BLOCK_BYTES,
                       vmem_limit_bytes=DEFAULT_VMEM_LIMIT):
    """GradientMagnitudeLayer.forward: (N,1,H,W) -> (N,1,H,W) Sobel gradient magnitude."""
    _check_input(x)
    out = _sobel_pallas(x[:, 0], reduce_sum=False,
                        max_block_bytes=max_block_bytes,
                        vmem_limit_bytes=vmem_limit_bytes)
    return out[:, None, :, :]


def gradient_magnitude_loss(x, offset=0.0, *, max_block_bytes=DEFAULT_BLOCK_BYTES,
                            vmem_limit_bytes=DEFAULT_VMEM_LIMIT):
    """GradientMagnitudeLoss.forward: mean_n | sum_{c,h,w} |grad_mag| - offset |.

    Fused: the kernel accumulates per-image sums of gm (gm >= 0, so |gm| == gm)
    in f32; only the tiny (N,1) partial-sum array touches HBM.
    """
    _check_input(x)
    sums = _sobel_pallas(x[:, 0], reduce_sum=True,
                         max_block_bytes=max_block_bytes,
                         vmem_limit_bytes=vmem_limit_bytes)
    per_image = sums[:, 0]
    return jnp.mean(jnp.abs(per_image - jnp.float32(offset)))


# ----------------------- pure-JAX reference (for checks) -----------------------
def _reference_grad_magnitude(x):
    kx = jnp.array(SOBEL_X, jnp.float32).reshape(1, 1, 3, 3)
    ky = jnp.array(SOBEL_Y, jnp.float32).reshape(1, 1, 3, 3)
    dn = jax.lax.conv_dimension_numbers(x.shape, kx.shape, ("NCHW", "OIHW", "NCHW"))
    xf = x.astype(jnp.float32)
    gx = jax.lax.conv_general_dilated(xf, kx, (1, 1), ((1, 1), (1, 1)),
                                      dimension_numbers=dn)
    gy = jax.lax.conv_general_dilated(xf, ky, (1, 1), ((1, 1), (1, 1)),
                                      dimension_numbers=dn)
    return jnp.sqrt(gx * gx + gy * gy).astype(x.dtype)


def _reference_loss(x, offset=0.0):
    gm = _reference_grad_magnitude(x).astype(jnp.float32)
    per_image = jnp.sum(jnp.abs(gm), axis=(1, 2, 3))
    return jnp.mean(jnp.abs(per_image - offset))


if __name__ == "__main__":
    key = jax.random.PRNGKey(0)

    # Small shape consistent with the module: (N, 1, H, W).
    N, C, H, W = 2, 1, 16, 16
    x = jax.random.normal(key, (N, C, H, W), dtype=jnp.float32)

    # GradientMagnitudeLayer (single-tile path).
    gm = jax.block_until_ready(gradient_magnitude(x))
    ref_gm = jax.block_until_ready(_reference_grad_magnitude(x))
    assert gm.shape == (N, 1, H, W)
    assert jnp.allclose(gm, ref_gm, atol=1e-5, rtol=1e-5), "grad-magnitude mismatch"

    # Fused GradientMagnitudeLoss (single-tile path), with and without offset.
    loss = jax.block_until_ready(gradient_magnitude_loss(x, offset=0.0))
    ref_loss = jax.block_until_ready(_reference_loss(x, offset=0.0))
    assert jnp.allclose(loss, ref_loss, atol=1e-3, rtol=1e-4), "loss mismatch"

    loss_off = jax.block_until_ready(gradient_magnitude_loss(x, offset=1.5))
    ref_loss_off = jax.block_until_ready(_reference_loss(x, offset=1.5))
    assert jnp.allclose(loss_off, ref_loss_off, atol=1e-3, rtol=1e-4), "offset loss mismatch"

    # Exercise the H-tiling / halo / multi-step-reduction path
    # (forces th=8, T=4, grid=(2, 4)).
    x2 = jax.random.normal(jax.random.PRNGKey(0), (2, 1, 32, 128), dtype=jnp.float32)
    small_blk = 8 * 128 * 4
    gm2 = jax.block_until_ready(gradient_magnitude(x2, max_block_bytes=small_blk))
    ref_gm2 = jax.block_until_ready(_reference_grad_magnitude(x2))
    assert jnp.allclose(gm2, ref_gm2, atol=1e-5, rtol=1e-5), "tiled grad-magnitude mismatch"

    loss2 = jax.block_until_ready(
        gradient_magnitude_loss(x2, offset=0.0, max_block_bytes=small_blk))
    ref_loss2 = jax.block_until_ready(_reference_loss(x2, offset=0.0))
    assert jnp.allclose(loss2, ref_loss2, atol=1e-3, rtol=1e-4), "tiled loss mismatch"

    print("KERNEL_OK")
</pallas_src>

<mosaic_0001>
module attributes {stable_mosaic.version = 11 : i64} {
  func.func @kernel(%arg0: i32, %arg1: i32, %arg2: memref<1x16x16xf32, #tpu.memory_space<vmem>>, %arg3: memref<1x16x16xf32, #tpu.memory_space<vmem>>) attributes {dimension_semantics = [#tpu.dimension_semantics<parallel>, #tpu.dimension_semantics<parallel>], iteration_bounds = array<i64: 2, 1>, scalar_prefetch = 0 : i64, scratch_operands = 0 : i64, tpu.core_type = #tpu.core_type<tc>, window_params = [{transform_indices = @transform_0, window_bounds = array<i64: 1, 16, 16>}, {transform_indices = @transform_1, window_bounds = array<i64: 1, 16, 16>}]} {
    %c0 = arith.constant 0 : index
    %c0_0 = arith.constant 0 : index
    %c0_1 = arith.constant 0 : index
    %0 = vector.load %arg2[%c0, %c0_0, %c0_1] : memref<1x16x16xf32, #tpu.memory_space<vmem>>, vector<1x16x16xf32>
    %1 = tpu.iota {dimensions = array<i32: 1>} : vector<1x16x1xi32>
    %c0_i32 = arith.constant 0 : i32
    %2 = vector.broadcast %c0_i32 : i32 to vector<1x16x1xi32>
    %3 = arith.cmpi eq, %1, %2 : vector<1x16x1xi32>
    %c15_i32 = arith.constant 15 : i32
    %4 = vector.broadcast %c15_i32 : i32 to vector<1x16x1xi32>
    %5 = arith.cmpi eq, %1, %4 : vector<1x16x1xi32>
    %c1_i32 = arith.constant 1 : i32
    %6 = tpu.dynamic_rotate %0 by %c1_i32 dim 1 : vector<1x16x16xf32>, i32 -> vector<1x16x16xf32>
    %cst = arith.constant 0.000000e+00 : f32
    %7 = vector.shape_cast %3 : vector<1x16x1xi1> to vector<1x16x1xi1>
    %8 = vector.broadcast %7 : vector<1x16x1xi1> to vector<1x16x16xi1>
    %9 = vector.broadcast %cst : f32 to vector<1x16x16xf32>
    %10 = arith.select %8, %9, %6 : vector<1x16x16xi1>, vector<1x16x16xf32>
    %c15_i32_2 = arith.constant 15 : i32
    %11 = tpu.dynamic_rotate %0 by %c15_i32_2 dim 1 : vector<1x16x16xf32>, i32 -> vector<1x16x16xf32>
    %cst_3 = arith.constant 0.000000e+00 : f32
    %12 = vector.shape_cast %5 : vector<1x16x1xi1> to vector<1x16x1xi1>
    %13 = vector.broadcast %12 : vector<1x16x1xi1> to vector<1x16x16xi1>
    %14 = vector.broadcast %cst_3 : f32 to vector<1x16x16xf32>
    %15 = arith.select %13, %14, %11 : vector<1x16x16xi1>, vector<1x16x16xf32>
    %cst_4 = arith.constant 2.000000e+00 : f32
    %16 = vector.broadcast %cst_4 : f32 to vector<1x16x16xf32>
    %17 = arith.mulf %16, %0 : vector<1x16x16xf32>
    %18 = arith.addf %10, %17 : vector<1x16x16xf32>
    %19 = arith.addf %18, %15 : vector<1x16x16xf32>
    %20 = arith.subf %15, %10 : vector<1x16x16xf32>
    %21 = tpu.iota {dimensions = array<i32: 2>} : vector<1x1x16xi32>
    %c0_i32_5 = arith.constant 0 : i32
    %22 = vector.broadcast %c0_i32_5 : i32 to vector<1x1x16xi32>
    %23 = arith.cmpi ne, %21, %22 : vector<1x1x16xi32>
    %24 = arith.extui %23 : vector<1x1x16xi1> to vector<1x1x16xi32>
    %25 = arith.sitofp %24 : vector<1x1x16xi32> to vector<1x1x16xf32>
    %c15_i32_6 = arith.constant 15 : i32
    %26 = vector.broadcast %c15_i32_6 : i32 to vector<1x1x16xi32>
    %27 = arith.cmpi ne, %21, %26 : vector<1x1x16xi32>
    %28 = arith.extui %27 : vector<1x1x16xi1> to vector<1x1x16xi32>
    %29 = arith.sitofp %28 : vector<1x1x16xi32> to vector<1x1x16xf32>
    %c15_i32_7 = arith.constant 15 : i32
    %30 = tpu.dynamic_rotate %19 by %c15_i32_7 dim 2 : vector<1x16x16xf32>, i32 -> vector<1x16x16xf32>
    %31 = vector.broadcast %29 : vector<1x1x16xf32> to vector<1x16x16xf32>
    %32 = arith.mulf %30, %31 : vector<1x16x16xf32>
    %c1_i32_8 = arith.constant 1 : i32
    %33 = tpu.dynamic_rotate %19 by %c1_i32_8 dim 2 : vector<1x16x16xf32>, i32 -> vector<1x16x16xf32>
    %34 = vector.broadcast %25 : vector<1x1x16xf32> to vector<1x16x16xf32>
    %35 = arith.mulf %33, %34 : vector<1x16x16xf32>
    %36 = arith.subf %32, %35 : vector<1x16x16xf32>
    %c1_i32_9 = arith.constant 1 : i32
    %37 = tpu.dynamic_rotate %20 by %c1_i32_9 dim 2 : vector<1x16x16xf32>, i32 -> vector<1x16x16xf32>
    %38 = vector.broadcast %25 : vector<1x1x16xf32> to vector<1x16x16xf32>
    %39 = arith.mulf %37, %38 : vector<1x16x16xf32>
    %cst_10 = arith.constant 2.000000e+00 : f32
    %40 = vector.broadcast %cst_10 : f32 to vector<1x16x16xf32>
    %41 = arith.mulf %40, %20 : vector<1x16x16xf32>
    %42 = arith.addf %39, %41 : vector<1x16x16xf32>
    %c15_i32_11 = arith.constant 15 : i32
    %43 = tpu.dynamic_rotate %20 by %c15_i32_11 dim 2 : vector<1x16x16xf32>, i32 -> vector<1x16x16xf32>
    %44 = vector.broadcast %29 : vector<1x1x16xf32> to vector<1x16x16xf32>
    %45 = arith.mulf %43, %44 : vector<1x16x16xf32>
    %46 = arith.addf %42, %45 : vector<1x16x16xf32>
    %47 = arith.mulf %36, %36 : vector<1x16x16xf32>
    %48 = arith.mulf %46, %46 : vector<1x16x16xf32>
    %49 = arith.addf %47, %48 : vector<1x16x16xf32>
    %50 = math.sqrt %49 : vector<1x16x16xf32>
    %c0_12 = arith.constant 0 : index
    %c0_13 = arith.constant 0 : index
    %c0_14 = arith.constant 0 : index
    %51 = vector.load %arg3[%c0_12, %c0_13, %c0_14] : memref<1x16x16xf32, #tpu.memory_space<vmem>>, vector<1x16x16xf32>
    tpu.vector_store %arg3[%c0_12, %c0_13, %c0_14], %50 {strides = array<i32>} : memref<1x16x16xf32, #tpu.memory_space<vmem>>, vector<1x16x16xf32>,
    return
  }
  func.func @transform_0(%arg0: i32, %arg1: i32) -> (i32, i32, i32) {
    %c0_i32 = arith.constant 0 : i32
    %c0_i32_0 = arith.constant 0 : i32
    return %arg0, %arg1, %c0_i32 : i32, i32, i32
  }
  func.func @transform_1(%arg0: i32, %arg1: i32) -> (i32, i32, i32) {
    %c0_i32 = arith.constant 0 : i32
    %c0_i32_0 = arith.constant 0 : i32
    return %arg0, %arg1, %c0_i32 : i32, i32, i32
  }
}

</mosaic_0001>

<bundles_post_ra>
// kernel: tpu_custom_call.1
= control target key start
LH: loop header
LB: loop body
LE: loop exit
PB: predicated region body
PF: predicated region fallthrough
CT: control target
= control target key end

     0   :  { %6 = vsyncpa [#allocation3], 0  ;;  %s845_s0 = inlined_call_operand.hbm [shape: f32[2,16,16], index: 0, kind: input, shape index: {}]   ;;  %s846_s1 = inlined_call_operand.hbm [shape: f32[2,16,16], index: 1, kind: output, shape index: {}]  }
   0x1   :  { %8 = vsyncpa [#allocation3 + $0x1], 0 }
   0x2   :  { %9 = vsyncpa [#allocation4], 0 }
   0x3   :  { %11 = vsyncpa [#allocation4 + $0x1], 0  ;;  %s650_s6 = smov 0   ;;  %s652_s7 = smov 0  }
   0x4   :  { %s654_s8 = smov 0   ;;  %s656_s9 = smov 0  }
   0x5   :  { %s658_s10 = smov 0   ;;  %s660_s11 = smov 0  }
   0x6 LB: > { %s417_s12 = sadd.s32 4294967295, %s625_s11   ;;  %s418_s13 = sadd.s32 4294967294, %s625_s11   ;;  %s625_s11 = sphi %s660_s11, %s17_s11   ;;  %s621_s10 = sphi %s658_s10, %s861_s10   ;;  %s617_s9 = sphi %s656_s9, %s860_s9   ;;  %s613_s8 = sphi %s654_s8, %s859_s8   ;;  %s609_s7 = sphi %s652_s7, %s858_s7   ;;  %s605_s6 = sphi %s650_s6, %s857_s6  }
   0x7   : > { %s29_s14 = sadd.s32 1, %s621_s10  ;;  %s38_s15 = sadd.s32 1, %s613_s8 }
   0x8   : > { %p31_p0 = scmp.ge.s32.totalorder %s29_s14, 2  ;;  %p45_p1 = scmp.ne.s32.totalorder %s613_s8, %s609_s7 }
   0x9   : > { %p46_p2 = scmp.eq.s32.totalorder %s625_s11, 0  ;;  %p51_p3 = scmp.ne.s32.totalorder %s609_s7, %s605_s6 }
   0xa   : > { %s863_s14 = smov (%p31_p0, %s29_s14), 0  ;;  %p52_p5 = scmp.eq.s32.totalorder %s417_s12, 0 }
   0xb   : > { %p691_p4 = por %p46_p2, %p45_p1  ;;  %s33_s17 = ssub.s32 %s621_s10, %s863_s14 }
   0xc   : > { %p77_p6 = scmp.eq.s32.totalorder %s417_s12, 1  ;;  %p36_p7 = scmp.eq.s32.totalorder %s33_s17, 0 }
   0xd   : > { %p697_p8 = por %p52_p5, %p51_p3  ;;  %p83_p10 = scmp.eq.s32.totalorder %s418_s13, 1 }
   0xe   : > { %p701_p9 = por %p77_p6, %p45_p1  ;;  %p448_p13 = scmp.lt.s32.totalorder %s625_s11, 2 }
   0xf   : > { %s706_s20 = scalar_select %p36_p7, %s613_s8, %s38_s15  }
  0x10   : > { %s850_s19 = scalar_select %p701_p9, 1, 0 }
  0x11   : > { %p708_p11 = por %p83_p10, %p51_p3  ;;  %s103_s22 = sand.u32 1, %s613_s8  }
  0x12   : > { %s421_s23 = sshll.u32 %s103_s22, 4  ;;  %s434_s24 = sshll.u32 %s621_s10, 8 }
  0x13   : > { %s851_s21 = scalar_select %p708_p11, 1, 0 }
  0x14   : > { %s719_s27 = scalar_lea.hbm %s845_s0, %s434_s24  ;;  %s107_s28 = scalar_lea.vmem [#allocation2], %s421_s23 }
  0x15   : > { %s116_s29 = sshll.u32 %s107_s28, 4  ;;  %p725_p0 = pnand %p448_p13, %p691_p4  ;;  %s721_s29 = int_to_ptr.vmem [resolvable:$true] %s116_s29 }
  0x16   : > { %s730_s2 = scalar_lea.sflag [#allocation3], %s103_s22  ;;  %s513_s3 = scalar_lea.hbm %s719_s27, 256 }
  0x17   : > { %p514_p2 = scmp.ne.s32.totalorder %s719_s27, %s513_s3  ;;  %p515_p3 = pneg %p725_p0 }
  0x18   : > { %s518_s12 = scalar_lea.hbm %s845_s0, 512  ;;  %p519_p4 = scmp.lt.u32.totalorder %s719_s27, %s845_s0 }
  0x19   : > { %p516_p5 = pnand %p515_p3, %p514_p2  ;;  %p520_p7 = scmp.lt.u32.totalorder %s518_s12, %s513_s3 }
  0x1a   : > { %p522_p13 = scmp.lt.u32.totalorder %s513_s3, %s719_s27 }
  0x1b   : > { %p517_p6 = pneg %p516_p5  ;;  %p521_p10 = por %p520_p7, %p519_p4 }
  0x1d   : > { %p523_p12 = por %p522_p13, %p521_p10 }
  0x1f   : > { %p524_p1 = pnand %p523_p12, %p517_p6 }
  0x21   : > { %527 = shalt.err (!%p524_p1)
}
  0x22   : > { %s528_s16 = scalar_lea.vmem %s721_s29, 256  ;;  %s627_s17 = smov [#allocation2]  }
  0x23   : > { %p529_p2 = scmp.ne.s32.totalorder %s721_s29, %s528_s16  ;;  %s533_s22 = sshll.u32 %s627_s17, 4  ;;  %s534_s22 = int_to_ptr.vmem [resolvable:$false] %s533_s22 }
  0x24   : > { %s535_s23 = scalar_lea.vmem %s534_s22, 512  ;;  %p536_p9 = scmp.lt.s32.totalorder %s721_s29, %s534_s22 }
  0x25   : > { %p531_p5 = pnand %p529_p2, %p515_p3  ;;  %p537_p4 = scmp.lt.s32.totalorder %s535_s23, %s528_s16 }
  0x27   : > { %p532_p11 = pneg %p531_p5  ;;  %p538_p7 = por %p537_p4, %p536_p9 }
  0x29   : > { %p539_p10 = pnand %p538_p7, %p532_p11 }
  0x2b   : > { %542 = shalt.err (!%p539_p10)
}
  0x2c   : > { %s628_s24 = smov 128   ;;  %s629_s25 = smov 8  }
  0x2d   : > { %443 = dma.hbm_to_vmem [thread:$0]  (!%p725_p0), %s719_s27, 256, %s721_s29, %s730_s2, %s628_s24, %s628_s24, %s629_s25  }
  0x2e   : > { %p124_p12 = scmp.lt.s32.totalorder %s625_s11, 3  ;;  %p853_p1 = scmp.ge.s32.totalorder %s625_s11, 1 }
  0x30   : > { %p125_p3 = pnand %p853_p1, %p124_p12 }
  0x31   : > { %s762_s26 = sand.u32 (!%p125_p3), 1, %s609_s7  }
  0x32   : > { %128 = sbr.rel (%p125_p3) target bundleno = 686 (0x2ae), region = 24  ;;  %s425_s28 = sshll.u32 (!%p125_p3), %s762_s26, 4 }
  0x33   : > { %s131_s3 = scalar_lea.sflag (!%p125_p3), [#allocation3], %s762_s26  ;;  %s134_s4 = scalar_lea.vmem (!%p125_p3), [#allocation2], %s425_s28 }
  0x39   : > { %596 = dma.done.wait (%p697_p8), %s131_s3, 256  }
  0x3a   : > { %598 = vsyncadd (%p697_p8), %s131_s3, 4294967040  ;;  %v157_v0 = vlaneseq  ;;  %v155_v3 = vld [vmem:[%s134_s4] sm:$0xff]  ;;  %v156_v4 = vld [vmem:[%s134_s4 + $0x8] sm:$0xff]  ;;  %s630_s18 = smov 16   ;;  %vm202_vm4 = vcmask 1047680   ;;  %v631_v27 = vmov 0.0  }
  0x3b   : > { %v164_v5 = vrot.slane %v155_v3, 7  ;;  %v165_v6 = vrot.slane %v156_v4, 7  ;;  %v175_v7 = vrot.slane %v155_v3, 1  ;;  %v176_v8 = vrot.slane %v156_v4, 1  ;;  %s632_s27 = smov 1   ;;  %s633_s29 = smov 15  }
  0x3c   : > { %v158_v1 = vshrl.u32 %v157_v0, 7  ;;  %v187_v9 = vmul.f32 2.0, %v156_v4  ;;  %v186_v10 = vmul.f32 2.0, %v155_v3  ;;  %v195_v23 = vand.u32 127, %v157_v0  ;;  %s634_s30 = smov 14   ;;  %s635_s2 = smov 114  }
  0x3d   : > { %s636_s5 = smov 127   ;;  %s152_s12 = scalar_lea.vmem [#allocation5], %s425_s28  ;;  %vm311_vm11 = vcmask 130048  }
  0x3e   : > { %v159_v2 = vadd.s32 8, %v158_v1  ;;  %vm160_vm0 = vcmp.eq.s32.totalorder %v158_v1, 0  ;;  %vm166_vm1 = vcmp.lt.s32.totalorder %v158_v1, 1  ;;  %vm177_vm2 = vcmp.lt.s32.totalorder %v158_v1, 7  ;;  %s330_s13 = sshll.u32 %s152_s12, 4  ;;  %s435_s15 = sshll.u32 %s617_s9, 8  ;;  %s791_s13 = int_to_ptr.vmem [resolvable:$true] %s330_s13 }
  0x3f   : > { %v168_v11 = vsel %vm166_vm1, %v165_v6, %v164_v5  ;;  %v178_v12 = vsel %vm177_vm2, %v175_v7, %v176_v8  ;;  %v167_v13 = vsel %vm166_vm1, %v164_v5, %v165_v6  ;;  %v179_v14 = vsel %vm177_vm2, %v176_v8, %v175_v7  ;;  %s796_s22 = scalar_lea.hbm %s846_s1, %s435_s15  ;;  %s315_s23 = scalar_lea.sflag [#allocation4], %s762_s26 }
  0x40   : > { %vm163_vm3 = vcmp.eq.s32.totalorder %v159_v2, 15  ;;  %v173_v15 = vsel %vm160_vm0, 0.0, %v168_v11  ;;  %v189_v17 = vadd.f32 %v187_v9, %v167_v13  ;;  %vm199_vm5 = vcmp.ne.s32.totalorder %v195_v23, 15  ;;  %s543_s24 = scalar_lea.vmem %s791_s13, 256  ;;  %p854_p9 = scmp.ne.s32.totalorder %s850_s19, 0 }
  0x41   : > { %v185_v16 = vsel %vm163_vm3, 0.0, %v179_v14  ;;  %v192_v18 = vsub.f32 %v178_v12, %v173_v15  ;;  %v188_v19 = vadd.f32 %v186_v10, %v173_v15  ;;  %v428_v28 = vsel %vm199_vm5, 1.0, %v631_v27  ;;  %p544_p8 = scmp.ne.s32.totalorder %s791_s13, %s543_s24  ;;  %s637_s9 = smov [#allocation5]  }
  0x42   : > { %v191_v20 = vadd.f32 %v189_v17, %v185_v16  ;;  %v193_v21 = vsub.f32 %v185_v16, %v167_v13  ;;  %vm196_vm6 = vcmp.ne.s32.totalorder %v195_v23, 0  ;;  %s547_s25 = sshll.u32 %s637_s9, 4  ;;  %s548_s25 = int_to_ptr.vmem [resolvable:$false] %s547_s25 }
  0x43   : > { %237 = vrot.lane.b32.xlu0 %v192_v18, %s630_s18  ;;  %v190_v22 = vadd.f32 %v188_v19, %v178_v12  ;;  %v251_v31 = vmul.f32 2.0, %v192_v18  ;;  %v427_v32 = vsel %vm196_vm6, 1.0, %v631_v27  ;;  %p545_p11 = pnand %p544_p8, %p854_p9  ;;  %s549_s28 = scalar_lea.vmem %s548_s25, 512 }
  0x44   : > { %206 = vrot.lane.b32.xlu1 %v191_v20, %s630_s18  ;;  %v252_v34 = vmul.f32 2.0, %v193_v21  ;;  %p550_p6 = scmp.lt.s32.totalorder %s791_s13, %s548_s25  ;;  %p551_p13 = scmp.lt.s32.totalorder %s549_s28, %s543_s24 }
  0x45   : > { %p546_p0 = pneg %p545_p11 }
  0x46   : > { %p552_p2 = por %p551_p13, %p550_p6 }
  0x47   : > { %240 = vrot.lane.b32.xlu0 %v193_v21, %s630_s18 }
  0x48   : > { %203 = vrot.lane.b32.xlu1 %v190_v22, %s630_s18  ;;  %p553_p5 = pnand %p552_p2, %p546_p0 }
  0xb5   : > { %v238_v24 = vpop.permute.xlu0 %237 }
  0xb6   : > { %v239_v25 = vsel %vm202_vm4, %v238_v24, %v192_v18  ;;  %v207_v26 = vpop.permute.xlu1 %206 }
  0xb7   : > { %243 = vrot.lane.b32.xlu0 %v239_v25, %s630_s18  ;;  %v208_v36 = vsel %vm202_vm4, %v207_v26, %v191_v20 }
  0xb9   : > { %v241_v29 = vpop.permute.xlu0 %240 }
  0xba   : > { %v242_v30 = vsel %vm202_vm4, %v241_v29, %v193_v21  ;;  %v204_v33 = vpop.permute.xlu1 %203 }
  0xbb   : > { %216 = vrot.lane.b32.xlu0 %v428_v28, %s632_s27  ;;  %245 = vrot.lane.b32.xlu1 %v242_v30, %s630_s18  ;;  %v205_v35 = vsel %vm202_vm4, %v204_v33, %v190_v22 }
  0xbf   : > { %255 = vrot.lane.b32.xlu0 %v251_v31, %s633_s29  ;;  %222 = vrot.lane.b32.xlu1 %v427_v32, %s633_s29 }
  0xc3   : > { %257 = vrot.lane.b32.xlu1 %v252_v34, %s633_s29  ;;  %209 = vrot.lane.b32.xlu0 %v205_v35, %s630_s18 }
  0xc7   : > { %211 = vrot.lane.b32.xlu1 %v208_v36, %s630_s18 }
 0x129   : > { %v244_v37 = vpop.permute.xlu0 %243 }
 0x12a   : > { %v247_v38 = vsel %vm202_vm4, %v244_v37, %v192_v18 }
 0x12d   : > { %v217_v39 = vpop.permute.xlu0 %216  ;;  %v246_v40 = vpop.permute.xlu1 %245 }
 0x12e   : > { %v248_v41 = vsel %vm202_vm4, %v246_v40, %v193_v21  ;;  %v263_v42 = vmul.f32 %v247_v38, %v217_v39 }
 0x12f   : > { %v264_v43 = vmul.f32 %v248_v41, %v217_v39 }
 0x130   : > { %267 = vrot.lane.b32.xlu0 %v263_v42, %s634_s30 }
 0x131   : > { %v256_v44 = vpop.permute.xlu0 %255  ;;  %269 = vrot.lane.b32.xlu1 %v264_v43, %s634_s30  ;;  %v223_v45 = vpop.permute.xlu1 %222 }
 0x132   : > { %v250_v46 = vmul.f32 %v248_v41, %v223_v45  ;;  %v249_v47 = vmul.f32 %v247_v38, %v223_v45 }
 0x134   : > { %v261_v48 = vadd.f32 %v256_v44, %v249_v47 }
 0x135   : > { %v210_v49 = vpop.permute.xlu0 %209  ;;  %v258_v50 = vpop.permute.xlu1 %257 }
 0x136   : > { %v213_v51 = vsel %vm202_vm4, %v210_v49, %v190_v22  ;;  %v262_v52 = vadd.f32 %v258_v50, %v250_v46 }
 0x137   : > { %v225_v53 = vmul.f32 %v223_v45, %v213_v51  ;;  %v219_v54 = vmul.f32 %v217_v39, %v213_v51 }
 0x139   : > { %229 = vrot.lane.b32.xlu0 %v225_v53, %s635_s2  ;;  %v212_v55 = vpop.permute.xlu1 %211 }
 0x13a   : > { %v214_v56 = vsel %vm202_vm4, %v212_v55, %v191_v20 }
 0x13b   : > { %v226_v57 = vmul.f32 %v223_v45, %v214_v56  ;;  %v220_v58 = vmul.f32 %v217_v39, %v214_v56 }
 0x13d   : > { %231 = vrot.lane.b32.xlu1 %v226_v57, %s635_s2 }
 0x1a2   : > { %v268_v59 = vpop.permute.xlu0 %267 }
 0x1a3   : > { %v273_v60 = vadd.f32 %v268_v59, %v261_v48  ;;  %v270_v61 = vpop.permute.xlu1 %269 }
 0x1a4   : > { %v274_v62 = vadd.f32 %v270_v61, %v262_v52 }
 0x1a5   : > { %v277_v63 = vmul.f32 %v273_v60, %v273_v60 }
 0x1a6   : > { %v278_v0 = vmul.f32 %v274_v62, %v274_v62 }
 0x1a7   : > { %281 = vrot.lane.b32.xlu0 %v277_v63, %s635_s2 }
 0x1a8   : > { %283 = vrot.lane.b32.xlu1 %v278_v0, %s635_s2 }
 0x1ab   : > { %v230_v1 = vpop.permute.xlu0 %229 }
 0x1ac   : > { %v235_v3 = vsub.f32 %v219_v54, %v230_v1 }
 0x1ae   : > { %v275_v5 = vmul.f32 %v235_v3, %v235_v3 }
 0x1af   : > { %v232_v2 = vpop.permute.xlu1 %231 }
 0x1b0   : > { %v236_v4 = vsub.f32 %v220_v58, %v232_v2 }
 0x1b2   : > { %v276_v6 = vmul.f32 %v236_v4, %v236_v4 }
 0x219   : > { %v282_v7 = vpop.permute.xlu0 %281 }
 0x21a   : > { %v287_v8 = vadd.f32 %v282_v7, %v275_v5  ;;  %v284_v9 = vpop.permute.xlu1 %283 }
 0x21b   : > { %v288_v10 = vadd.f32 %v284_v9, %v276_v6 }
 0x21c   : > { %509 = vrsqrt.f32 %v287_v8  ;;  %vm291_vm7 = vcmp.eq.f32.partialorder %v287_v8, inf  ;;  %v294_v14 = vand.u32 2147483648, %v287_v8  ;;  %vm293_vm8 = vcmp.eq.f32.partialorder %v287_v8, 0.0 }
 0x21d   : > { %511 = vrsqrt.f32 %v288_v10  ;;  %vm298_vm9 = vcmp.eq.f32.partialorder %v288_v10, inf  ;;  %v301_v17 = vand.u32 2147483648, %v288_v10  ;;  %vm300_vm10 = vcmp.eq.f32.partialorder %v288_v10, 0.0 }
 0x226   : > { %v510_v11 = vpop.eup %509 }
 0x227   : > { %v512_v12 = vpop.eup %511  ;;  %v290_v13 = vmul.f32 %v510_v11, %v287_v8 }
 0x228   : > { %v297_v15 = vmul.f32 %v512_v12, %v288_v10 }
 0x229   : > { %v292_v16 = vsel %vm291_vm7, %v287_v8, %v290_v13 }
 0x22a   : > { %v295_v18 = vsel %vm293_vm8, %v294_v14, %v292_v16  ;;  %v299_v19 = vsel %vm298_vm9, %v288_v10, %v297_v15 }
 0x22b   : > { %305 = vrot.lane.b32.xlu0 %v295_v18, %s636_s5  ;;  %v302_v20 = vsel %vm300_vm10, %v301_v17, %v299_v19 }
 0x22c   : > { %307 = vrot.lane.b32.xlu1 %v302_v20, %s636_s5 }
 0x29d   : > { %v306_v21 = vpop.permute.xlu0 %305 }
 0x29e   : > { %312 = vst.msk [vmem:[%s152_s12] sm:$0xff] %vm311_vm11, %v306_v21  ;;  %v308_v22 = vpop.permute.xlu1 %307 }
 0x29f   : > { %313 = vst.msk [vmem:[%s152_s12 + $0x8] sm:$0xff] %vm311_vm11, %v308_v22 }
 0x2a0   : > { %556 = shalt.err (!%p553_p5)
}
 0x2a1   : > { %s557_s3 = scalar_lea.hbm %s796_s22, 256  ;;  %s561_s27 = scalar_lea.hbm %s846_s1, 512 }
 0x2a2   : > { %p558_p4 = scmp.ne.s32.totalorder %s796_s22, %s557_s3  ;;  %p562_p12 = scmp.lt.u32.totalorder %s796_s22, %s846_s1 }
 0x2a3   : > { %p563_p1 = scmp.lt.u32.totalorder %s561_s27, %s557_s3  ;;  %p565_p8 = scmp.lt.u32.totalorder %s557_s3, %s796_s22 }
 0x2a4   : > { %p559_p7 = pnand %p558_p4, %p854_p9 }
 0x2a5   : > { %p564_p3 = por %p563_p1, %p562_p12 }
 0x2a6   : > { %p560_p10 = pneg %p559_p7 }
 0x2a7   : > { %p566_p11 = por %p565_p8, %p564_p3 }
 0x2a9   : > { %p567_p0 = pnand %p566_p11, %p560_p10 }
 0x2ab   : > { %570 = shalt.err (!%p567_p0)
}
 0x2ac   : > { %s638_s2 = smov 128   ;;  %s639_s5 = smov 8  }
 0x2ad   : > { %438 = dma.vmem_to_hbm [thread:$0]  (%p854_p9), %s791_s13, 256, %s796_s22, %s315_s23, %s638_s2, %s638_s2, %s639_s5  }
 0x2ae PF: > { %s345_s12 = sand.u32 1, %s605_s6   ;;  %p855_p6 = scmp.ne.s32.totalorder %s851_s21, 0 }
 0x2af   : > { %p856_p13 = scmp.ge.s32.totalorder %s625_s11, 2  ;;  %s346_s15 = scalar_lea.sflag [#allocation4], %s345_s12 }
 0x2b1   : > { %p445_p2 = pnand %p856_p13, %p855_p6 }
 0x2b3   : > { %600 = dma.done.wait (!%p445_p2), %s346_s15, 256  }
 0x2b4   : > { %602 = vsyncadd (!%p445_p2), %s346_s15, 4294967040  ;;  %s17_s11 = sadd.s32 1, %s625_s11   ;;  %s857_s6 = smov %s609_s7 }
 0x2b5   : > { %p14_p5 = scmp.ge.s32.totalorder %s17_s11, 4   ;;  %s858_s7 = smov %s613_s8 }
 0x2b6   : > { %s859_s8 = smov %s706_s20  ;;  %s860_s9 = smov %s621_s10 }
 0x2b7   : > { %s861_s10 = smov %s863_s14  ;;  %16 = sbr.rel (!%p14_p5) target bundleno = 6 (0x6), region = 69 }
 0x2be   :  { %351 = vsyncpa [#allocation3], 1 }
 0x2bf   :  { %353 = vsyncpa [#allocation3 + $0x1], 1 }
 0x2c0   :  { %354 = vsyncpa [#allocation4], 1 }
 0x2c1   :  { %356 = vsyncpa [#allocation4 + $0x1], 1 }

</bundles_post_ra>
